<compile_context>
chip_gen: v6e
topology: v6e:2x2x1
jax: 0.10.0
libtpu: 0.0.40
codegen_flags: <defaults>
</compile_context>

<pallas_src>
import functools

import jax
import jax.numpy as jnp
from jax.experimental import pallas as pl
from jax.experimental.pallas import tpu as pltpu

_MiB = 1024 * 1024
_STAGE2_VMEM_BUDGET = 36 * _MiB   # working-set target; fits v7x's 64 MiB VMEM
_H1_RESIDENT_BUDGET = 24 * _MiB   # max bytes for a fully VMEM-resident H1
_VMEM_LIMIT_CAP = 52 * _MiB


def _round_up(x, m):
    return ((x + m - 1) // m) * m


def _pick_col_tile(dim, pref=512):
    """Largest tile from {pref, 256, 128} dividing `dim` (dim is mult of 128)."""
    if dim <= pref:
        return dim
    for t in (pref, 256, 128):
        if dim % t == 0:
            return t
    return 128


def _pad2d(x, rows, cols, dtype):
    """Cast to dtype; zero-pad to (rows, cols) only if the shape differs."""
    x = x.astype(dtype)
    if x.shape == (rows, cols):
        return x
    return jnp.zeros((rows, cols), dtype).at[: x.shape[0], : x.shape[1]].set(x)


def _vmem_limit(footprint):
    return int(min(max(int(1.25 * footprint), 32 * _MiB), _VMEM_LIMIT_CAP))


# ---------------------------------------------------------------------------
# Stage 1: H1 = X @ W + b   (rows x output-column grid, compute-dtype output)
# ---------------------------------------------------------------------------
def _linear_kernel(x_ref, w_ref, b_ref, o_ref):
    h = jnp.dot(x_ref[...], w_ref[...], preferred_element_type=jnp.float32)
    h = h + b_ref[...]                      # (TM, TO) + (1, TO), f32
    o_ref[...] = h.astype(o_ref.dtype)


def _linear(Xp, Wp, bp, *, tile_m, tile_o, out_dtype):
    Np, Ip = Xp.shape
    Op = Wp.shape[1]
    grid = (Np // tile_m, Op // tile_o)
    csz = Xp.dtype.itemsize
    osz = jnp.dtype(out_dtype).itemsize
    # Double-buffered X / W / bias / out blocks.
    footprint = (2 * tile_m * Ip * csz + 2 * Ip * tile_o * csz
                 + 2 * tile_o * 4 + 2 * tile_m * tile_o * osz)
    flops = 2 * Np * Ip * Op
    bytes_accessed = int(Xp.size * csz * grid[1] + Wp.size * csz * grid[0]
                         + bp.size * 4 + Np * Op * osz)
    # TODO(synk): K-tile this stage when Ip is very large (X block holds full Ip).
    return pl.pallas_call(
        _linear_kernel,
        out_shape=jax.ShapeDtypeStruct((Np, Op), out_dtype),
        grid_spec=pltpu.PrefetchScalarGridSpec(
            num_scalar_prefetch=0,
            grid=grid,
            in_specs=[
                pl.BlockSpec((tile_m, Ip), lambda i, j: (i, 0)),
                pl.BlockSpec((Ip, tile_o), lambda i, j: (0, j)),
                pl.BlockSpec((1, tile_o), lambda i, j: (0, j)),
            ],
            out_specs=pl.BlockSpec((tile_m, tile_o), lambda i, j: (i, j)),
        ),
        compiler_params=pltpu.CompilerParams(
            dimension_semantics=("parallel", "parallel"),
            vmem_limit_bytes=_vmem_limit(footprint),
        ),
        cost_estimate=pl.CostEstimate(
            flops=flops, transcendentals=0, bytes_accessed=bytes_accessed),
    )(Xp, Wp, bp)


# ---------------------------------------------------------------------------
# Stage 2: O = epilogue(A @ H1)  (row x k grid, f32 acc, fused relu/dropout)
# ---------------------------------------------------------------------------
def _spmm_kernel(a_ref, h_ref, *rest, apply_relu, apply_dropout, h1_resident,
                 tile_k, keep_thresh, keep_scale):
    if apply_dropout:
        bits_ref, o_ref, acc_ref = rest
    else:
        o_ref, acc_ref = rest

    # program_id is read OUTSIDE any pl.when branch (interpret/cond-safe).
    k = pl.program_id(1)
    last_k = pl.num_programs(1) - 1

    @pl.when(k == 0)
    def _():
        acc_ref[...] = jnp.zeros_like(acc_ref)

    if h1_resident:
        h_blk = h_ref[pl.ds(k * tile_k, tile_k), :]   # slice the resident H1
    else:
        h_blk = h_ref[...]
    acc_ref[...] += jnp.dot(a_ref[...], h_blk,
                            preferred_element_type=jnp.float32)

    @pl.when(k == last_k)
    def _():
        h = acc_ref[...]
        if apply_relu:
            h = jnp.maximum(h, 0.0)
        if apply_dropout:
            keep = bits_ref[...] >= jnp.uint32(keep_thresh)
            h = jnp.where(keep, h * keep_scale, 0.0)
        o_ref[...] = h.astype(o_ref.dtype)


def _spmm_epilogue(Ap, H1p, bits, *, tile_m, tile_k, h1_resident,
                   apply_relu, apply_dropout, drop):
    Np = Ap.shape[0]
    Op = H1p.shape[1]
    grid = (Np // tile_m, Np // tile_k)

    keep_thresh = min(int(float(drop) * 4294967296.0), 4294967295)
    keep_scale = 1.0 / (1.0 - float(drop)) if drop < 1.0 else 0.0

    kernel = functools.partial(
        _spmm_kernel,
        apply_relu=apply_relu,
        apply_dropout=apply_dropout,
        h1_resident=h1_resident,
        tile_k=tile_k,
        keep_thresh=keep_thresh,
        keep_scale=keep_scale,
    )

    csz = Ap.dtype.itemsize
    if h1_resident:
        h1_spec = pl.BlockSpec((Np, Op), lambda i, k: (0, 0))   # fetched once
        h1_vmem = 2 * Np * Op * csz
        h1_reads = Np * Op * csz
    else:
        h1_spec = pl.BlockSpec((tile_k, Op), lambda i, k: (k, 0))
        h1_vmem = 2 * tile_k * Op * csz
        h1_reads = grid[0] * Np * Op * csz

    in_specs = [pl.BlockSpec((tile_m, tile_k), lambda i, k: (i, k)), h1_spec]
    args = [Ap, H1p]
    if apply_dropout:
        in_specs.append(pl.BlockSpec((tile_m, Op), lambda i, k: (i, 0)))
        args.append(bits)

    footprint = (2 * tile_m * tile_k * csz + h1_vmem + 3 * tile_m * Op * 4
                 + (2 * tile_m * Op * 4 if apply_dropout else 0))
    flops = 2 * Np * Np * Op
    bytes_accessed = int(Ap.size * csz + h1_reads + Np * Op * 4
                         + (Np * Op * 4 if apply_dropout else 0))

    return pl.pallas_call(
        kernel,
        out_shape=jax.ShapeDtypeStruct((Np, Op), jnp.float32),
        grid_spec=pltpu.PrefetchScalarGridSpec(
            num_scalar_prefetch=0,
            grid=grid,
            in_specs=in_specs,
            out_specs=pl.BlockSpec((tile_m, Op), lambda i, k: (i, 0)),
            scratch_shapes=[pltpu.VMEM((tile_m, Op), jnp.float32)],
        ),
        compiler_params=pltpu.CompilerParams(
            dimension_semantics=("parallel", "arbitrary"),
            vmem_limit_bytes=_vmem_limit(footprint),
        ),
        cost_estimate=pl.CostEstimate(
            flops=flops, transcendentals=0, bytes_accessed=bytes_accessed),
    )(*args)


# ---------------------------------------------------------------------------
# Public wrapper
# ---------------------------------------------------------------------------
def message_passing(X, W, b, A, *, drop=0.5, relu=True, out=False,
                    training=False, seed=0,
                    tile=512, compute_dtype=jnp.bfloat16):
    """Pallas implementation of MessagePassing.forward.

    X: (N, I) node features, W: (I, O) weight (already transposed from torch),
    b: (O,) bias, A: (N, N) dense adjacency stand-in for the sparse spmm.
    MXU operands use `compute_dtype` (bf16 default); accumulation and the
    relu/dropout epilogue are float32.
    """
    N, I = X.shape
    O = W.shape[1]
    apply_relu = (not out) and relu
    apply_dropout = (not out) and training and (drop > 0.0)

    # F.dropout(p=1) zeroes everything; avoid the 1/(1-p) Inf.
    if apply_dropout and drop >= 1.0:
        return jnp.zeros((N, O), jnp.float32)

    cdt = jnp.dtype(compute_dtype)
    csz = cdt.itemsize

    # ---- padded, lane/sublane-dense shapes (pad copy skipped if aligned) ---
    tile = max(128, _round_up(tile, 128))
    Ip = _round_up(I, 128)
    Op = _round_up(O, 128)
    base = _round_up(N, 128)
    if base <= tile:
        tile_n, Np = base, base
    else:
        tile_n = tile
        Np = _round_up(N, tile_n)
    # v7x has 2 TensorCores: keep >= 2 row tiles when possible so the
    # "parallel" row axis can actually be sharded.
    if Np // tile_n < 2 and Np >= 256 and Np % 256 == 0:
        tile_n = Np // 2

    # ---- stage-2 tiling / H1 residency / VMEM math --------------------------
    tile_k = tile_n
    tile_m = tile_n
    h1_bytes = 2 * Np * Op * csz

    def s2_footprint(tm, resident):
        f = 2 * tm * tile_k * csz
        f += h1_bytes if resident else 2 * tile_k * Op * csz
        f += 3 * tm * Op * 4                       # out (x2) + acc, f32
        if apply_dropout:
            f += 2 * tm * Op * 4                   # uint32 dropout bits
        return f

    h1_resident = (h1_bytes <= _H1_RESIDENT_BUDGET
                   and s2_footprint(tile_m, True) <= _STAGE2_VMEM_BUDGET)
    while s2_footprint(tile_m, h1_resident) > _STAGE2_VMEM_BUDGET and tile_m > 128:
        tile_m //= 2

    tile_o = _pick_col_tile(Op, 512)

    Xp = _pad2d(X, Np, Ip, cdt)
    Wp = _pad2d(W, Ip, Op, cdt)
    bp = _pad2d(b.reshape(1, -1), 1, Op, jnp.float32)
    Ap = _pad2d(A, Np, Np, cdt)        # only a cast when already aligned

    # ---- stage 1: H1 = X @ W + b  (computed once, kept in compute dtype) ----
    H1p = _linear(Xp, Wp, bp, tile_m=tile_m, tile_o=tile_o, out_dtype=cdt)

    # ---- dropout bit-stream (drawn outside the kernel; applied in epilogue) -
    bits = None
    if apply_dropout:
        bits = jax.random.bits(jax.random.PRNGKey(seed), (Np, Op),
                               dtype=jnp.uint32)

    # ---- stage 2: epilogue(A @ H1), tiled with f32 accumulator --------------
    Hp = _spmm_epilogue(Ap, H1p, bits,
                        tile_m=tile_m, tile_k=tile_k, h1_resident=h1_resident,
                        apply_relu=apply_relu, apply_dropout=apply_dropout,
                        drop=drop)
    return Hp[:N, :O]


if __name__ == "__main__":
    key = jax.random.PRNGKey(0)
    k_x, k_w, k_b, k_a = jax.random.split(key, 4)

    N, I, O = 16, 32, 32

    X = jax.random.normal(k_x, (N, I), dtype=jnp.float32)
    # Deterministic Linear params (stand-in for torch default init).
    W = jax.random.uniform(k_w, (I, O), dtype=jnp.float32,
                           minval=-1.0 / jnp.sqrt(I), maxval=1.0 / jnp.sqrt(I))
    b = jax.random.uniform(k_b, (O,), dtype=jnp.float32,
                           minval=-1.0 / jnp.sqrt(I), maxval=1.0 / jnp.sqrt(I))
    # Dense "adjacency" (row-normalized random graph) standing in for sparse A.
    A_raw = (jax.random.uniform(k_a, (N, N), dtype=jnp.float32) > 0.5
             ).astype(jnp.float32) + jnp.eye(N, dtype=jnp.float32)
    A = A_raw / jnp.sum(A_raw, axis=1, keepdims=True)

    # Pure-JAX reference (eval mode: dropout disabled).
    ref = jnp.maximum(A @ (X @ W + b), 0.0)

    # 1) f32 compute path: tight check.
    out_f32 = message_passing(X, W, b, A, drop=0.5, relu=True, out=False,
                              training=False, compute_dtype=jnp.float32)
    out_f32 = jax.block_until_ready(out_f32)
    assert out_f32.shape == (N, O)
    assert jnp.allclose(out_f32, ref, atol=1e-4, rtol=1e-4), "f32 mismatch"

    # 2) default bf16 MXU operands (f32 accumulation): loose check.
    out_bf16 = message_passing(X, W, b, A, drop=0.5, relu=True, out=False,
                               training=False)
    out_bf16 = jax.block_until_ready(out_bf16)
    assert out_bf16.shape == (N, O)
    assert jnp.allclose(out_bf16, ref, atol=5e-2, rtol=5e-2), "bf16 mismatch"

    # 3) training-mode dropout path (stochastic; sanity checks only).
    out_tr = message_passing(X, W, b, A, drop=0.5, relu=True, out=False,
                             training=True, seed=1234)
    out_tr = jax.block_until_ready(out_tr)
    assert out_tr.shape == (N, O)
    assert bool(jnp.all(jnp.isfinite(out_tr)))

    print("KERNEL_OK")
</pallas_src>

<mosaic_0001>
module attributes {stable_mosaic.version = 11 : i64} {
  func.func @_linear_kernel(%arg0: i32, %arg1: i32, %arg2: memref<128x128xf32, #tpu.memory_space<vmem>>, %arg3: memref<128x128xf32, #tpu.memory_space<vmem>>, %arg4: memref<1x128xf32, #tpu.memory_space<vmem>>, %arg5: memref<128x128xf32, #tpu.memory_space<vmem>>) attributes {dimension_semantics = [#tpu.dimension_semantics<parallel>, #tpu.dimension_semantics<parallel>], iteration_bounds = array<i64: 1, 1>, scalar_prefetch = 0 : i64, scratch_operands = 0 : i64, tpu.core_type = #tpu.core_type<tc>, window_params = [{transform_indices = @transform_0, window_bounds = array<i64: 128, 128>}, {transform_indices = @transform_1, window_bounds = array<i64: 128, 128>}, {transform_indices = @transform_2, window_bounds = array<i64: 1, 128>}, {transform_indices = @transform_3, window_bounds = array<i64: 128, 128>}]} {
    %c0 = arith.constant 0 : index
    %c0_0 = arith.constant 0 : index
    %0 = vector.load %arg2[%c0, %c0_0] : memref<128x128xf32, #tpu.memory_space<vmem>>, vector<128x128xf32>
    %c0_1 = arith.constant 0 : index
    %c0_2 = arith.constant 0 : index
    %1 = vector.load %arg3[%c0_1, %c0_2] : memref<128x128xf32, #tpu.memory_space<vmem>>, vector<128x128xf32>
    %cst = arith.constant dense<0.000000e+00> : vector<128x128xf32>
    %2 = tpu.matmul %0, %1, %cst {dimension_numbers = #tpu.dot_dimension_numbers<[1], [0], [0], [1], [0, 0, 1, 1], [], []>} : vector<128x128xf32>, vector<128x128xf32>, vector<128x128xf32> -> vector<128x128xf32>
    %c0_3 = arith.constant 0 : index
    %c0_4 = arith.constant 0 : index
    %3 = vector.load %arg4[%c0_3, %c0_4] : memref<1x128xf32, #tpu.memory_space<vmem>>, vector<1x128xf32>
    %4 = vector.broadcast %3 : vector<1x128xf32> to vector<128x128xf32>
    %5 = arith.addf %2, %4 : vector<128x128xf32>
    %c0_5 = arith.constant 0 : index
    %c0_6 = arith.constant 0 : index
    %6 = vector.load %arg5[%c0_5, %c0_6] : memref<128x128xf32, #tpu.memory_space<vmem>>, vector<128x128xf32>
    tpu.vector_store %arg5[%c0_5, %c0_6], %5 {strides = array<i32>} : memref<128x128xf32, #tpu.memory_space<vmem>>, vector<128x128xf32>,
    return
  }
  func.func @transform_0(%arg0: i32, %arg1: i32) -> (i32, i32) {
    %c0_i32 = arith.constant 0 : i32
    %c0_i32_0 = arith.constant 0 : i32
    return %arg0, %c0_i32 : i32, i32
  }
  func.func @transform_1(%arg0: i32, %arg1: i32) -> (i32, i32) {
    %c0_i32 = arith.constant 0 : i32
    %c0_i32_0 = arith.constant 0 : i32
    return %c0_i32, %arg1 : i32, i32
  }
  func.func @transform_2(%arg0: i32, %arg1: i32) -> (i32, i32) {
    %c0_i32 = arith.constant 0 : i32
    %c0_i32_0 = arith.constant 0 : i32
    return %c0_i32, %arg1 : i32, i32
  }
  func.func @transform_3(%arg0: i32, %arg1: i32) -> (i32, i32) {
    %c0_i32 = arith.constant 0 : i32
    return %arg0, %arg1 : i32, i32
  }
}

</mosaic_0001>

<bundles_post_ra>
// kernel: tpu_custom_call.1
= control target key start
LH: loop header
LB: loop body
LE: loop exit
PB: predicated region body
PF: predicated region fallthrough
CT: control target
= control target key end

     0   :  { %8 = vsyncpa [#allocation3], 0  ;;  %s499_s0 = inlined_call_operand.hbm [shape: f32[128,128], index: 0, kind: input, shape index: {}]   ;;  %s500_s1 = inlined_call_operand.hbm [shape: f32[128,128], index: 1, kind: input, shape index: {}]   ;;  %s501_s2 = inlined_call_operand.vmem [shape: f32[1,128], index: 2, kind: input, shape index: {}]   ;;  %s502_s3 = inlined_call_operand.hbm [shape: f32[128,128], index: 3, kind: output, shape index: {}]  }
   0x1   :  { %9 = vsyncpa [#allocation6], 0 }
   0x2   :  { %10 = vsyncpa [#allocation4], 0  ;;  %s453_s12 = smov [#allocation2]  }
   0x3   :  { %s16_s13 = sshll.u32 %s453_s12, 4  ;;  %s17_s13 = int_to_ptr.vmem [resolvable:$true] %s16_s13 }
   0x4   :  { %s395_s14 = scalar_lea.vmem %s17_s13, 2048  ;;  %p400_p1 = scmp.lt.s32.totalorder %s17_s13, %s17_s13 }
   0x5   :  { %p396_p0 = scmp.ne.s32.totalorder %s17_s13, %s395_s14  ;;  %p401_p2 = scmp.lt.s32.totalorder %s395_s14, %s395_s14 }
   0x7   :  { %p402_p3 = por %p401_p2, %p400_p1 }
   0x9   :  { %p403_p4 = pnand %p402_p3, %p396_p0 }
   0xb   :  { %406 = shalt.err (!%p403_p4)
}
   0xc   :  { %s454_s15 = smov 128   ;;  %s455_s16 = smov 8  }
   0xd   :  { %22 = dma.hbm_to_vmem [thread:$0]  %s499_s0, 2048, %s17_s13, [#allocation3], %s454_s15, %s454_s15, %s455_s16  }
   0xe   :  { %s456_s19 = smov [#allocation5]  }
   0xf   :  { %s28_s20 = sshll.u32 %s456_s19, 4  ;;  %s29_s20 = int_to_ptr.vmem [resolvable:$true] %s28_s20 }
  0x10   :  { %s415_s21 = scalar_lea.vmem %s29_s20, 2048  ;;  %p420_p6 = scmp.lt.s32.totalorder %s29_s20, %s29_s20 }
  0x11   :  { %p416_p5 = scmp.ne.s32.totalorder %s29_s20, %s415_s21  ;;  %p421_p7 = scmp.lt.s32.totalorder %s415_s21, %s415_s21 }
  0x13   :  { %p422_p8 = por %p421_p7, %p420_p6 }
  0x15   :  { %p423_p9 = pnand %p422_p8, %p416_p5 }
  0x17   :  { %426 = shalt.err (!%p423_p9)
}
  0x18   :  { %34 = dma.hbm_to_vmem [thread:$0]  %s500_s1, 2048, %s29_s20, [#allocation6], %s454_s15, %s454_s15, %s455_s16  }
  0x19   :  { %447 = dma.done.wait [#allocation3], 2048  }
  0x1a   :  { %448 = vsyncadd [#allocation3], 4294965248 }
  0x1b   :  { %449 = dma.done.wait [#allocation6], 2048  }
  0x1c   :  { %450 = vsyncadd [#allocation6], 4294965248  ;;  %v74_v0 = vld [vmem:[#allocation5 + $0x78] sm:$0xff]  ;;  %v73_v1 = vld [vmem:[#allocation5 + $0x70] sm:$0xff] }
  0x1d   :  { %294 = vmatprep.subr.mxu0 %v74_v0  ;;  %350 = vmatprep.subr.mxu1 %v74_v0  ;;  %v72_v2 = vld [vmem:[#allocation5 + $0x68] sm:$0xff]  ;;  %v71_v3 = vld [vmem:[#allocation5 + $0x60] sm:$0xff]  ;;  %v70_v4 = vld [vmem:[#allocation5 + $0x58] sm:$0xff] }
  0x1e   :  { %295 = vmatpush3.msra.mxu0 %v74_v0  ;;  %366 = vmatpush3.msra.mxu1 %v74_v0  ;;  %v69_v5 = vld [vmem:[#allocation5 + $0x50] sm:$0xff]  ;;  %v68_v6 = vld [vmem:[#allocation5 + $0x48] sm:$0xff]  ;;  %v67_v7 = vld [vmem:[#allocation5 + $0x40] sm:$0xff] }
  0x1f   :  { %296 = vmatprep.subr.mxu0 %v73_v1  ;;  %351 = vmatprep.subr.mxu1 %v73_v1  ;;  %v66_v8 = vld [vmem:[#allocation5 + $0x38] sm:$0xff]  ;;  %v65_v9 = vld [vmem:[#allocation5 + $0x30] sm:$0xff]  ;;  %v64_v10 = vld [vmem:[#allocation5 + $0x28] sm:$0xff] }
  0x20   :  { %297 = vmatpush3.msra.mxu0 %v73_v1  ;;  %367 = vmatpush3.msra.mxu1 %v73_v1  ;;  %v63_v11 = vld [vmem:[#allocation5 + $0x20] sm:$0xff]  ;;  %v62_v12 = vld [vmem:[#allocation5 + $0x18] sm:$0xff]  ;;  %v61_v13 = vld [vmem:[#allocation5 + $0x10] sm:$0xff] }
  0x21   :  { %298 = vmatprep.subr.mxu0 %v72_v2  ;;  %352 = vmatprep.subr.mxu1 %v72_v2  ;;  %v60_v14 = vld [vmem:[#allocation5 + $0x8] sm:$0xff]  ;;  %v59_v15 = vld [vmem:[#allocation5] sm:$0xff]  ;;  %v45_v20 = vld [vmem:[#allocation2 + $0x10] sm:$0xff] }
  0x22   :  { %299 = vmatpush3.msra.mxu0 %v72_v2  ;;  %368 = vmatpush3.msra.mxu1 %v72_v2  ;;  %v43_v16 = vld [vmem:[#allocation2] sm:$0xff]  ;;  %v44_v18 = vld [vmem:[#allocation2 + $0x8] sm:$0xff]  ;;  %v53_v21 = vld [vmem:[#allocation2 + $0x50] sm:$0xff] }
  0x23   :  { %300 = vmatprep.subr.mxu0 %v71_v3  ;;  %353 = vmatprep.subr.mxu1 %v71_v3  ;;  %v51_v17 = vld [vmem:[#allocation2 + $0x40] sm:$0xff]  ;;  %v52_v19 = vld [vmem:[#allocation2 + $0x48] sm:$0xff]  ;;  %v46_v22 = vld [vmem:[#allocation2 + $0x18] sm:$0xff] }
  0x24   :  { %301 = vmatpush3.msra.mxu0 %v71_v3  ;;  %369 = vmatpush3.msra.mxu1 %v71_v3  ;;  %v54_v23 = vld [vmem:[#allocation2 + $0x58] sm:$0xff]  ;;  %v47_v24 = vld [vmem:[#allocation2 + $0x20] sm:$0xff]  ;;  %v48_v26 = vld [vmem:[#allocation2 + $0x28] sm:$0xff] }
  0x25   :  { %302 = vmatprep.subr.mxu0 %v70_v4  ;;  %354 = vmatprep.subr.mxu1 %v70_v4  ;;  %v55_v25 = vld [vmem:[#allocation2 + $0x60] sm:$0xff]  ;;  %v56_v27 = vld [vmem:[#allocation2 + $0x68] sm:$0xff]  ;;  %v49_v28 = vld [vmem:[#allocation2 + $0x30] sm:$0xff] }
  0x26   :  { %303 = vmatpush3.msra.mxu0 %v70_v4  ;;  %370 = vmatpush3.msra.mxu1 %v70_v4  ;;  %v57_v29 = vld [vmem:[#allocation2 + $0x70] sm:$0xff]  ;;  %v50_v30 = vld [vmem:[#allocation2 + $0x38] sm:$0xff]  ;;  %v261_v32 = vld [vmem:[%s501_s2] ss:$0 sm:$0xff]  ;;  %s457_s2 = smov [#allocation7]  }
  0x27   :  { %304 = vmatprep.subr.mxu0 %v69_v5  ;;  %355 = vmatprep.subr.mxu1 %v69_v5  ;;  %v58_v31 = vld [vmem:[#allocation2 + $0x78] sm:$0xff]  ;;  %s248_s24 = sshll.u32 %s457_s2, 4  ;;  %s249_s24 = int_to_ptr.vmem [resolvable:$true] %s248_s24 }
  0x28   :  { %305 = vmatpush3.msra.mxu0 %v69_v5  ;;  %371 = vmatpush3.msra.mxu1 %v69_v5  ;;  %s427_s25 = scalar_lea.vmem %s249_s24, 2048  ;;  %p432_p11 = scmp.lt.s32.totalorder %s249_s24, %s249_s24 }
  0x29   :  { %306 = vmatprep.subr.mxu0 %v68_v6  ;;  %356 = vmatprep.subr.mxu1 %v68_v6  ;;  %p428_p10 = scmp.ne.s32.totalorder %s249_s24, %s427_s25  ;;  %p433_p12 = scmp.lt.s32.totalorder %s427_s25, %s427_s25 }
  0x2a   :  { %307 = vmatpush3.msra.mxu0 %v68_v6  ;;  %372 = vmatpush3.msra.mxu1 %v68_v6 }
  0x2b   :  { %308 = vmatprep.subr.mxu0 %v67_v7  ;;  %357 = vmatprep.subr.mxu1 %v67_v7  ;;  %p434_p13 = por %p433_p12, %p432_p11 }
  0x2c   :  { %309 = vmatpush3.msra.mxu0 %v67_v7  ;;  %373 = vmatpush3.msra.mxu1 %v67_v7 }
  0x2d   :  { %310 = vmatprep.subr.mxu0 %v66_v8  ;;  %358 = vmatprep.subr.mxu1 %v66_v8  ;;  %p435_p0 = pnand %p434_p13, %p428_p10 }
  0x2e   :  { %311 = vmatpush3.msra.mxu0 %v66_v8  ;;  %374 = vmatpush3.msra.mxu1 %v66_v8 }
  0x2f   :  { %312 = vmatprep.subr.mxu0 %v65_v9  ;;  %359 = vmatprep.subr.mxu1 %v65_v9 }
  0x30   :  { %313 = vmatpush3.msra.mxu0 %v65_v9  ;;  %375 = vmatpush3.msra.mxu1 %v65_v9 }
  0x31   :  { %314 = vmatprep.subr.mxu0 %v64_v10  ;;  %360 = vmatprep.subr.mxu1 %v64_v10 }
  0x32   :  { %315 = vmatpush3.msra.mxu0 %v64_v10  ;;  %376 = vmatpush3.msra.mxu1 %v64_v10 }
  0x33   :  { %316 = vmatprep.subr.mxu0 %v63_v11  ;;  %361 = vmatprep.subr.mxu1 %v63_v11 }
  0x34   :  { %317 = vmatpush3.msra.mxu0 %v63_v11  ;;  %377 = vmatpush3.msra.mxu1 %v63_v11 }
  0x35   :  { %318 = vmatprep.subr.mxu0 %v62_v12  ;;  %362 = vmatprep.subr.mxu1 %v62_v12 }
  0x36   :  { %319 = vmatpush3.msra.mxu0 %v62_v12  ;;  %378 = vmatpush3.msra.mxu1 %v62_v12 }
  0x37   :  { %320 = vmatprep.subr.mxu0 %v61_v13  ;;  %363 = vmatprep.subr.mxu1 %v61_v13 }
  0x38   :  { %321 = vmatpush3.msra.mxu0 %v61_v13  ;;  %379 = vmatpush3.msra.mxu1 %v61_v13 }
  0x39   :  { %322 = vmatprep.subr.mxu0 %v60_v14  ;;  %364 = vmatprep.subr.mxu1 %v60_v14 }
  0x3a   :  { %323 = vmatpush3.msra.mxu0 %v60_v14  ;;  %380 = vmatpush3.msra.mxu1 %v60_v14 }
  0x3b   :  { %324 = vmatprep.subr.mxu0 %v59_v15  ;;  %365 = vmatprep.subr.mxu1 %v59_v15 }
  0x3c   :  { %325 = vmatpush3.msra.mxu0 %v59_v15  ;;  %381 = vmatpush3.msra.mxu1 %v59_v15 }
  0x3d   :  { %326 = vmatprep.mubr.f32.mxu0 %v43_v16  ;;  %338 = vmatprep.mubr.f32.mxu1 %v51_v17 }
  0x3e   :  { %327 = vmatmul.mubr.f32.vlgmr.msra.gmra.mxu0 %v44_v18  ;;  %339 = vmatmul.mubr.f32.vlgmr.msra.gmra.mxu1 %v52_v19 }
  0x3f   :  { %329 = vmatprep.mubr.f32.mxu0 %v45_v20  ;;  %341 = vmatprep.mubr.f32.mxu1 %v53_v21 }
  0x42   :  { %330 = vmatmul.mubr.f32.gmra.mxu0 %v46_v22  ;;  %342 = vmatmul.mubr.f32.gmra.mxu1 %v54_v23 }
  0x43   :  { %332 = vmatprep.mubr.f32.mxu0 %v47_v24  ;;  %344 = vmatprep.mubr.f32.mxu1 %v55_v25 }
  0x46   :  { %333 = vmatmul.mubr.f32.gmra.mxu0 %v48_v26  ;;  %345 = vmatmul.mubr.f32.gmra.mxu1 %v56_v27 }
  0x47   :  { %335 = vmatprep.mubr.f32.mxu0 %v49_v28  ;;  %347 = vmatprep.mubr.f32.mxu1 %v57_v29 }
  0x4a   :  { %336 = vmatmul.mubr.f32.gmra.mxu0 %v50_v30  ;;  %348 = vmatmul.mubr.f32.gmra.mxu1 %v58_v31 }
  0xfe   :  { %v328_v33 = vpop.f32.mrf.mxu0  ;;  %v340_v34 = vpop.f32.mrf.mxu1 }
  0xff   :  { %v154_v35 = vadd.f32 %v328_v33, %v261_v32  ;;  %v194_v36 = vadd.f32 %v340_v34, %v261_v32 }
 0x100   :  { %v148_v37 = vpop.f32.mrf.mxu0  ;;  %v188_v38 = vpop.f32.mrf.mxu1 }
 0x101   :  { %228 = vst [vmem:[#allocation7 + $0x8] sm:$0xff] %v154_v35  ;;  %236 = vst [vmem:[#allocation7 + $0x48] sm:$0xff] %v194_v36  ;;  %v149_v39 = vadd.f32 %v261_v32, %v148_v37  ;;  %v189_v40 = vadd.f32 %v261_v32, %v188_v38 }
 0x102   :  { %v331_v41 = vpop.f32.mrf.mxu0  ;;  %v343_v42 = vpop.f32.mrf.mxu1 }
 0x103   :  { %227 = vst [vmem:[#allocation7] sm:$0xff] %v149_v39  ;;  %235 = vst [vmem:[#allocation7 + $0x40] sm:$0xff] %v189_v40  ;;  %v164_v43 = vadd.f32 %v331_v41, %v261_v32  ;;  %v204_v44 = vadd.f32 %v343_v42, %v261_v32 }
 0x104   :  { %v158_v45 = vpop.f32.mrf.mxu0  ;;  %v198_v46 = vpop.f32.mrf.mxu1 }
 0x105   :  { %230 = vst [vmem:[#allocation7 + $0x18] sm:$0xff] %v164_v43  ;;  %238 = vst [vmem:[#allocation7 + $0x58] sm:$0xff] %v204_v44  ;;  %v159_v47 = vadd.f32 %v261_v32, %v158_v45  ;;  %v199_v48 = vadd.f32 %v261_v32, %v198_v46 }
 0x106   :  { %v334_v49 = vpop.f32.mrf.mxu0  ;;  %v346_v50 = vpop.f32.mrf.mxu1 }
 0x107   :  { %229 = vst [vmem:[#allocation7 + $0x10] sm:$0xff] %v159_v47  ;;  %237 = vst [vmem:[#allocation7 + $0x50] sm:$0xff] %v199_v48  ;;  %v174_v51 = vadd.f32 %v334_v49, %v261_v32  ;;  %v214_v52 = vadd.f32 %v346_v50, %v261_v32 }
 0x108   :  { %v168_v53 = vpop.f32.mrf.mxu0  ;;  %v208_v54 = vpop.f32.mrf.mxu1 }
 0x109   :  { %232 = vst [vmem:[#allocation7 + $0x28] sm:$0xff] %v174_v51  ;;  %240 = vst [vmem:[#allocation7 + $0x68] sm:$0xff] %v214_v52  ;;  %v169_v55 = vadd.f32 %v261_v32, %v168_v53  ;;  %v209_v56 = vadd.f32 %v261_v32, %v208_v54 }
 0x10a   :  { %v337_v57 = vpop.f32.mrf.mxu0  ;;  %v349_v58 = vpop.f32.mrf.mxu1 }
 0x10b   :  { %231 = vst [vmem:[#allocation7 + $0x20] sm:$0xff] %v169_v55  ;;  %239 = vst [vmem:[#allocation7 + $0x60] sm:$0xff] %v209_v56  ;;  %v184_v59 = vadd.f32 %v337_v57, %v261_v32  ;;  %v224_v60 = vadd.f32 %v349_v58, %v261_v32 }
 0x10c   :  { %v178_v61 = vpop.f32.mrf.mxu0  ;;  %v218_v62 = vpop.f32.mrf.mxu1 }
 0x10d   :  { %234 = vst [vmem:[#allocation7 + $0x38] sm:$0xff] %v184_v59  ;;  %242 = vst [vmem:[#allocation7 + $0x78] sm:$0xff] %v224_v60  ;;  %v179_v63 = vadd.f32 %v261_v32, %v178_v61  ;;  %v219_v0 = vadd.f32 %v261_v32, %v218_v62 }
 0x10f   :  { %233 = vst [vmem:[#allocation7 + $0x30] sm:$0xff] %v179_v63  ;;  %241 = vst [vmem:[#allocation7 + $0x70] sm:$0xff] %v219_v0 }
 0x110   :  { %438 = shalt.err (!%p435_p0)
}
 0x111   :  { %254 = dma.vmem_to_hbm [thread:$0]  %s249_s24, 2048, %s502_s3, [#allocation4], %s454_s15, %s454_s15, %s455_s16  }
 0x112   :  { %451 = dma.done.wait [#allocation4], 2048  }
 0x113   :  { %452 = vsyncadd [#allocation4], 4294965248 }
 0x114   :  { %258 = vsyncpa [#allocation3], 1 }
 0x115   :  { %259 = vsyncpa [#allocation6], 1 }
 0x116   :  { %260 = vsyncpa [#allocation4], 1 }

</bundles_post_ra>
